<compile_context>
chip_gen: v5e
topology: v5e:2x2
jax: 0.10.0
libtpu: 0.0.40
codegen_flags: <defaults>
</compile_context>

<pallas_src>
from functools import partial

import jax
import jax.numpy as jnp
from jax.experimental import pallas as pl
from jax.experimental.pallas import tpu as pltpu


def _cdiv(a, b):
    return (a + b - 1) // b


def _round_up(n, m):
    return _cdiv(n, m) * m


def _sublane(dtype):
    # Second-to-last-dim tile granularity for a given element size.
    return {4: 8, 2: 16, 1: 32}[jnp.dtype(dtype).itemsize]


def _vmem_budget_bytes():
    try:
        cap = int(pltpu.get_tpu_info().vmem_capacity_bytes)
    except Exception:
        cap = 64 * 1024 * 1024          # conservative (v7x per-TC VMEM)
    return max(32 * 1024 * 1024, int(cap * 0.85))


def prepare_ffn_params(w1, b1, w2, b2, *, compute_dtype=jnp.bfloat16):
    """Pad to lane-dense multiples of 128 and cast ONCE at parameter-setup time,
    so the per-call path does no weight copies."""
    D, H = w1.shape
    assert w2.shape == (H, D) and b1.shape == (H,) and b2.shape == (D,)
    Dp = _round_up(D, 128)
    Hp = _round_up(H, 128)
    w1p = jnp.pad(w1, ((0, Dp - D), (0, Hp - H))).astype(compute_dtype)
    w2p = jnp.pad(w2, ((0, Hp - H), (0, Dp - D))).astype(compute_dtype)
    b1p = jnp.pad(b1, (0, Hp - H)).astype(jnp.float32).reshape(1, Hp)
    b2p = jnp.pad(b2, (0, Dp - D)).astype(jnp.float32).reshape(1, Dp)
    return dict(w1=w1p, b1=b1p, w2=w2p, b2=b2p,
                dim=D, hidden=H, dim_pad=Dp, hidden_pad=Hp)


def _scale_ffn_kernel(x_ref, w1_ref, b1_ref, w2_ref, b2_ref, o_ref, acc_ref, *, scale):
    # fn(x): Linear -> Swish -> Linear  ;  then  * scale   (grid = (row tiles, H chunks))
    j = pl.program_id(1)

    @pl.when(j == 0)
    def _init():
        acc_ref[...] = jnp.zeros_like(acc_ref)

    x = x_ref[...].astype(w1_ref.dtype)                       # bf16 MXU operands
    h = jnp.dot(x, w1_ref[...], preferred_element_type=jnp.float32)
    h = h + b1_ref[...]                                       # bias in f32 accumulator
    h = h * jax.nn.sigmoid(h)                                 # Swish / SiLU (EUP)
    acc_ref[...] += jnp.dot(h.astype(w2_ref.dtype), w2_ref[...],
                            preferred_element_type=jnp.float32)

    @pl.when(j == pl.num_programs(1) - 1)
    def _finalize():
        # Scale.forward: fn(x) * scale
        o_ref[...] = ((acc_ref[...] + b2_ref[...]) * scale).astype(o_ref.dtype)


def scale_ffn(x, params, scale, *, block_rows=None, max_h_chunk=None):
    """Scale(scale, FeedForward)(x) with x: [B, S, D] and params from prepare_ffn_params."""
    B, S, D = x.shape
    assert D == params["dim"]
    Dp, Hp = params["dim_pad"], params["hidden_pad"]
    w1p, b1p, w2p, b2p = params["w1"], params["b1"], params["w2"], params["b2"]
    M = B * S

    budget = _vmem_budget_bytes()
    sub = _sublane(x.dtype)
    if block_rows is None:
        block_rows = 1024 if budget >= 96 * 1024 * 1024 else 512

    # Row tile: multiple of the dtype sublane tile, capped by the (aligned) row count.
    TM = min(_round_up(block_rows, sub), _round_up(M, sub))
    # Ensure the "parallel" row axis has >= 2 steps so both v7x TensorCores get
    # work (costs nothing on single-TC v5e/v6e).
    if M > sub and _cdiv(M, TM) < 2:
        TM = _round_up(_cdiv(M, 2), sub)

    x_item = jnp.dtype(x.dtype).itemsize
    w_item = jnp.dtype(w1p.dtype).itemsize
    o_item = x_item

    def vmem_est(tm, th, wbufs=2):
        act = 2 * tm * Dp * x_item                # x tiles (double buffered)
        out = 2 * tm * Dp * o_item                # out tiles (double buffered)
        acc = tm * Dp * 4                         # f32 accumulator scratch
        hbuf = tm * th * 4                        # f32 hidden intermediate headroom
        wts = wbufs * ((Dp * th + th * Dp) * w_item + (th + Dp) * 4)
        return act + out + acc + hbuf + wts

    # Shrink the row tile if even a minimal H chunk would not fit.
    while TM > sub and vmem_est(TM, 128) > budget:
        TM = max(sub, _round_up(TM // 2, sub))

    # Hidden-dim chunk: largest multiple-of-128 divisor of Hp that fits VMEM
    # (TH == Hp -> single reduction step, weights fully resident).
    n128 = Hp // 128
    cap128 = n128 if max_h_chunk is None else max(1, min(n128, max_h_chunk // 128))
    TH = 128
    for d in range(cap128, 0, -1):
        if n128 % d == 0 and vmem_est(TM, d * 128) <= budget:
            TH = d * 128
            break

    n_m = _cdiv(M, TM)            # trailing partial row block is masked by Pallas
    n_h = Hp // TH

    # Activation feature padding only when D is not already lane-aligned.
    x2d = x.reshape(M, D)
    if Dp != D:
        x2d = jnp.pad(x2d, ((0, 0), (0, Dp - D)))

    cost = pl.CostEstimate(
        flops=4 * M * Dp * Hp,
        transcendentals=M * Hp,
        bytes_accessed=(M * Dp * (x_item + o_item)
                        + 2 * Dp * Hp * w_item + (Hp + Dp) * 4),
    )

    def build(weight_mode):
        # Constant-index operands only ever need one buffer; H-chunked (varying)
        # operands keep default double buffering so their DMA overlaps compute.
        const_kw = {} if weight_mode is None else {"pipeline_mode": weight_mode}
        chunk_kw = const_kw if n_h == 1 else {}
        return pl.pallas_call(
            # scale baked as a Python float (0.5 in the Conformer); a traced
            # scale would need an SMEM scalar operand instead.
            partial(_scale_ffn_kernel, scale=float(scale)),
            out_shape=jax.ShapeDtypeStruct((M, Dp), x.dtype),
            grid_spec=pltpu.PrefetchScalarGridSpec(
                num_scalar_prefetch=0,
                grid=(n_m, n_h),
                in_specs=[
                    pl.BlockSpec((TM, Dp), lambda i, j: (i, 0)),              # x row tile
                    pl.BlockSpec((Dp, TH), lambda i, j: (0, j), **chunk_kw),  # w1 chunk
                    pl.BlockSpec((1, TH), lambda i, j: (0, j), **chunk_kw),   # b1 chunk
                    pl.BlockSpec((TH, Dp), lambda i, j: (j, 0), **chunk_kw),  # w2 chunk
                    pl.BlockSpec((1, Dp), lambda i, j: (0, 0), **const_kw),   # b2
                ],
                out_specs=pl.BlockSpec((TM, Dp), lambda i, j: (i, 0)),        # out row tile
                scratch_shapes=[pltpu.VMEM((TM, Dp), jnp.float32)],
            ),
            compiler_params=pltpu.CompilerParams(
                dimension_semantics=("parallel", "arbitrary"),
                vmem_limit_bytes=int(budget),
            ),
            cost_estimate=cost,
        )

    # Single-buffer the constant weight operands; fall back to the default
    # pipeline if this Pallas build rejects Buffered(1).
    try:
        out2d = build(pl.Buffered(1))(x2d, w1p, b1p, w2p, b2p)
    except Exception:
        out2d = build(None)(x2d, w1p, b1p, w2p, b2p)

    if Dp != D:
        out2d = out2d[:, :D]
    return out2d.reshape(B, S, D)


def reference(x, w1, b1, w2, b2, scale):
    h = x @ w1 + b1
    h = h * jax.nn.sigmoid(h)
    return (h @ w2 + b2) * scale


if __name__ == "__main__":
    key = jax.random.PRNGKey(0)
    k_x, k_w1, k_b1, k_w2, k_b2, k_x2 = jax.random.split(key, 6)

    SCALE = 0.5     # Scale(0.5, FeedForward(dim)) as used for ff1 / ff2 in ConformerBlock

    # ---- Test 1: bf16 MXU path (production precision), small Conformer-ish shapes
    B, S, D, MULT = 2, 8, 32, 4
    H = D * MULT
    x = jax.random.normal(k_x, (B, S, D), dtype=jnp.float32)
    w1 = jax.random.normal(k_w1, (D, H), dtype=jnp.float32) * 0.05
    b1 = jax.random.normal(k_b1, (H,), dtype=jnp.float32) * 0.05
    w2 = jax.random.normal(k_w2, (H, D), dtype=jnp.float32) * 0.05
    b2 = jax.random.normal(k_b2, (D,), dtype=jnp.float32) * 0.05
    ref = reference(x, w1, b1, w2, b2, SCALE)

    params_bf16 = prepare_ffn_params(w1, b1, w2, b2, compute_dtype=jnp.bfloat16)
    out_bf16 = jax.block_until_ready(scale_ffn(x, params_bf16, SCALE))
    assert out_bf16.shape == (B, S, D)
    assert jnp.allclose(out_bf16, ref, atol=2e-2, rtol=2e-2), "bf16 path mismatch"

    # ---- Test 2: f32 compute path, tight tolerance vs reference
    params_f32 = prepare_ffn_params(w1, b1, w2, b2, compute_dtype=jnp.float32)
    out_f32 = jax.block_until_ready(scale_ffn(x, params_f32, SCALE))
    assert jnp.allclose(out_f32, ref, atol=1e-5, rtol=1e-5), "f32 path mismatch"

    # ---- Test 3: exercise the H-chunked accumulator + masked trailing row tile
    B3, S3, D3, H3 = 2, 7, 32, 256
    x3 = jax.random.normal(k_x2, (B3, S3, D3), dtype=jnp.float32)
    w1_3 = jax.random.normal(k_w1, (D3, H3), dtype=jnp.float32) * 0.05
    b1_3 = jax.random.normal(k_b1, (H3,), dtype=jnp.float32) * 0.05
    w2_3 = jax.random.normal(k_w2, (H3, D3), dtype=jnp.float32) * 0.05
    b2_3 = jax.random.normal(k_b2, (D3,), dtype=jnp.float32) * 0.05
    ref3 = reference(x3, w1_3, b1_3, w2_3, b2_3, SCALE)
    params3 = prepare_ffn_params(w1_3, b1_3, w2_3, b2_3, compute_dtype=jnp.float32)
    out3 = jax.block_until_ready(scale_ffn(x3, params3, SCALE, max_h_chunk=128))
    assert out3.shape == (B3, S3, D3)
    assert jnp.allclose(out3, ref3, atol=1e-4, rtol=1e-4), "H-chunked path mismatch"

    print("KERNEL_OK")
</pallas_src>

<mosaic_0001>
module attributes {stable_mosaic.version = 11 : i64} {
  func.func @_scale_ffn_kernel(%arg0: i32, %arg1: i32, %arg2: memref<8x128xf32, #tpu.memory_space<vmem>>, %arg3: memref<128x128xbf16, #tpu.memory_space<vmem>>, %arg4: memref<1x128xf32, #tpu.memory_space<vmem>>, %arg5: memref<128x128xbf16, #tpu.memory_space<vmem>>, %arg6: memref<1x128xf32, #tpu.memory_space<vmem>>, %arg7: memref<8x128xf32, #tpu.memory_space<vmem>>, %arg8: memref<8x128xf32, #tpu.memory_space<vmem>>) attributes {dimension_semantics = [#tpu.dimension_semantics<parallel>, #tpu.dimension_semantics<arbitrary>], iteration_bounds = array<i64: 2, 1>, scalar_prefetch = 0 : i64, scratch_operands = 1 : i64, tpu.core_type = #tpu.core_type<tc>, window_params = [{transform_indices = @transform_0, window_bounds = array<i64: 8, 128>}, {pipeline_mode = #tpu.pipeline_mode<synchronous>, transform_indices = @transform_1, window_bounds = array<i64: 128, 128>}, {pipeline_mode = #tpu.pipeline_mode<synchronous>, transform_indices = @transform_2, window_bounds = array<i64: 1, 128>}, {pipeline_mode = #tpu.pipeline_mode<synchronous>, transform_indices = @transform_3, window_bounds = array<i64: 128, 128>}, {pipeline_mode = #tpu.pipeline_mode<synchronous>, transform_indices = @transform_4, window_bounds = array<i64: 1, 128>}, {transform_indices = @transform_5, window_bounds = array<i64: 8, 128>}]} {
    %c0_i32 = arith.constant 0 : i32
    %0 = arith.cmpi eq, %arg1, %c0_i32 : i32
    %1 = arith.extui %0 : i1 to i32
    %c0_i32_0 = arith.constant 0 : i32
    %2 = arith.cmpi ne, %1, %c0_i32_0 : i32
    scf.if %2 {
      %cst_16 = arith.constant 0.000000e+00 : f32
      %25 = vector.broadcast %cst_16 : f32 to vector<8x128xf32>
      %c0_17 = arith.constant 0 : index
      %c0_18 = arith.constant 0 : index
      %26 = vector.load %arg8[%c0_17, %c0_18] : memref<8x128xf32, #tpu.memory_space<vmem>>, vector<8x128xf32>
      tpu.vector_store %arg8[%c0_17, %c0_18], %25 {strides = array<i32>} : memref<8x128xf32, #tpu.memory_space<vmem>>, vector<8x128xf32>,
    } else {
    }
    %c0 = arith.constant 0 : index
    %c0_1 = arith.constant 0 : index
    %3 = vector.load %arg2[%c0, %c0_1] : memref<8x128xf32, #tpu.memory_space<vmem>>, vector<8x128xf32>
    %4 = arith.truncf %3 : vector<8x128xf32> to vector<8x128xbf16>
    %c0_2 = arith.constant 0 : index
    %c0_3 = arith.constant 0 : index
    %5 = vector.load %arg3[%c0_2, %c0_3] : memref<128x128xbf16, #tpu.memory_space<vmem>>, vector<128x128xbf16>
    %cst = arith.constant dense<0.000000e+00> : vector<8x128xf32>
    %6 = tpu.matmul %4, %5, %cst {dimension_numbers = #tpu.dot_dimension_numbers<[1], [0], [0], [1], [0, 0, 1, 1], [], []>} : vector<8x128xbf16>, vector<128x128xbf16>, vector<8x128xf32> -> vector<8x128xf32>
    %c0_4 = arith.constant 0 : index
    %c0_5 = arith.constant 0 : index
    %7 = vector.load %arg4[%c0_4, %c0_5] : memref<1x128xf32, #tpu.memory_space<vmem>>, vector<1x128xf32>
    %8 = vector.broadcast %7 : vector<1x128xf32> to vector<8x128xf32>
    %9 = arith.addf %6, %8 : vector<8x128xf32>
    %10 = arith.negf %9 : vector<8x128xf32>
    %11 = math.exp %10 : vector<8x128xf32>
    %cst_6 = arith.constant 1.000000e+00 : f32
    %12 = vector.broadcast %cst_6 : f32 to vector<8x128xf32>
    %13 = arith.addf %12, %11 : vector<8x128xf32>
    %14 = arith.divf %12, %13 : vector<8x128xf32>
    %15 = arith.mulf %9, %14 : vector<8x128xf32>
    %c0_7 = arith.constant 0 : index
    %c0_8 = arith.constant 0 : index
    %16 = vector.load %arg8[%c0_7, %c0_8] : memref<8x128xf32, #tpu.memory_space<vmem>>, vector<8x128xf32>
    %17 = arith.truncf %15 : vector<8x128xf32> to vector<8x128xbf16>
    %c0_9 = arith.constant 0 : index
    %c0_10 = arith.constant 0 : index
    %18 = vector.load %arg5[%c0_9, %c0_10] : memref<128x128xbf16, #tpu.memory_space<vmem>>, vector<128x128xbf16>
    %cst_11 = arith.constant dense<0.000000e+00> : vector<8x128xf32>
    %19 = tpu.matmul %17, %18, %cst_11 {dimension_numbers = #tpu.dot_dimension_numbers<[1], [0], [0], [1], [0, 0, 1, 1], [], []>} : vector<8x128xbf16>, vector<128x128xbf16>, vector<8x128xf32> -> vector<8x128xf32>
    %20 = arith.addf %16, %19 : vector<8x128xf32>
    %c0_12 = arith.constant 0 : index
    %c0_13 = arith.constant 0 : index
    %21 = vector.load %arg8[%c0_12, %c0_13] : memref<8x128xf32, #tpu.memory_space<vmem>>, vector<8x128xf32>
    tpu.vector_store %arg8[%c0_12, %c0_13], %20 {strides = array<i32>} : memref<8x128xf32, #tpu.memory_space<vmem>>, vector<8x128xf32>,
    %c0_i32_14 = arith.constant 0 : i32
    %22 = arith.cmpi eq, %arg1, %c0_i32_14 : i32
    %23 = arith.extui %22 : i1 to i32
    %c0_i32_15 = arith.constant 0 : i32
    %24 = arith.cmpi ne, %23, %c0_i32_15 : i32
    scf.if %24 {
      %c0_16 = arith.constant 0 : index
      %c0_17 = arith.constant 0 : index
      %25 = vector.load %arg8[%c0_16, %c0_17] : memref<8x128xf32, #tpu.memory_space<vmem>>, vector<8x128xf32>
      %c0_18 = arith.constant 0 : index
      %c0_19 = arith.constant 0 : index
      %26 = vector.load %arg6[%c0_18, %c0_19] : memref<1x128xf32, #tpu.memory_space<vmem>>, vector<1x128xf32>
      %27 = vector.broadcast %26 : vector<1x128xf32> to vector<8x128xf32>
      %28 = arith.addf %25, %27 : vector<8x128xf32>
      %cst_20 = arith.constant 5.000000e-01 : f32
      %29 = vector.broadcast %cst_20 : f32 to vector<8x128xf32>
      %30 = arith.mulf %28, %29 : vector<8x128xf32>
      %c0_21 = arith.constant 0 : index
      %c0_22 = arith.constant 0 : index
      %31 = vector.load %arg7[%c0_21, %c0_22] : memref<8x128xf32, #tpu.memory_space<vmem>>, vector<8x128xf32>
      tpu.vector_store %arg7[%c0_21, %c0_22], %30 {strides = array<i32>} : memref<8x128xf32, #tpu.memory_space<vmem>>, vector<8x128xf32>,
    } else {
    }
    return
  }
  func.func @transform_0(%arg0: i32, %arg1: i32) -> (i32, i32) {
    %c0_i32 = arith.constant 0 : i32
    %c0_i32_0 = arith.constant 0 : i32
    return %arg0, %c0_i32 : i32, i32
  }
  func.func @transform_1(%arg0: i32, %arg1: i32) -> (i32, i32) {
    %c0_i32 = arith.constant 0 : i32
    %c0_i32_0 = arith.constant 0 : i32
    return %c0_i32, %arg1 : i32, i32
  }
  func.func @transform_2(%arg0: i32, %arg1: i32) -> (i32, i32) {
    %c0_i32 = arith.constant 0 : i32
    %c0_i32_0 = arith.constant 0 : i32
    return %c0_i32, %arg1 : i32, i32
  }
  func.func @transform_3(%arg0: i32, %arg1: i32) -> (i32, i32) {
    %c0_i32 = arith.constant 0 : i32
    %c0_i32_0 = arith.constant 0 : i32
    return %arg1, %c0_i32 : i32, i32
  }
  func.func @transform_4(%arg0: i32, %arg1: i32) -> (i32, i32) {
    %c0_i32 = arith.constant 0 : i32
    %c0_i32_0 = arith.constant 0 : i32
    %c0_i32_1 = arith.constant 0 : i32
    return %c0_i32, %c0_i32_0 : i32, i32
  }
  func.func @transform_5(%arg0: i32, %arg1: i32) -> (i32, i32) {
    %c0_i32 = arith.constant 0 : i32
    %c0_i32_0 = arith.constant 0 : i32
    return %arg0, %c0_i32 : i32, i32
  }
}

module attributes {stable_mosaic.version = 11 : i64} {
  func.func @_scale_ffn_kernel(%arg0: i32, %arg1: i32, %arg2: memref<8x128xf32, #tpu.memory_space<vmem>>, %arg3: memref<128x128xbf16, #tpu.memory_space<vmem>>, %arg4: memref<1x128xf32, #tpu.memory_space<vmem>>, %arg5: memref<128x128xbf16, #tpu.memory_space<vmem>>, %arg6: memref<1x128xf32, #tpu.memory_space<vmem>>, %arg7: memref<8x128xf32, #tpu.memory_space<vmem>>, %arg8: memref<8x128xf32, #tpu.memory_space<vmem>>) attributes {dimension_semantics = [#tpu.dimension_semantics<parallel>, #tpu.dimension_semantics<arbitrary>], iteration_bounds = array<i64: 2, 1>, scalar_prefetch = 0 : i64, scratch_operands = 1 : i64, tpu.core_type = #tpu.core_type<tc>, window_params = [{transform_indices = @transform_0, window_bounds = array<i64: 8, 128>}, {transform_indices = @transform_1, window_bounds = array<i64: 128, 128>}, {transform_indices = @transform_2, window_bounds = array<i64: 1, 128>}, {transform_indices = @transform_3, window_bounds = array<i64: 128, 128>}, {pipeline_mode = #tpu.pipeline_mode<synchronous>, transform_indices = @transform_4, window_bounds = array<i64: 1, 128>}, {transform_indices = @transform_5, window_bounds = array<i64: 8, 128>}]} {
    %c0_i32 = arith.constant 0 : i32
    %0 = arith.cmpi eq, %arg1, %c0_i32 : i32
    %1 = arith.extui %0 : i1 to i32
    %c0_i32_0 = arith.constant 0 : i32
    %2 = arith.cmpi ne, %1, %c0_i32_0 : i32
    scf.if %2 {
      %cst_16 = arith.constant 0.000000e+00 : f32
      %25 = vector.broadcast %cst_16 : f32 to vector<8x128xf32>
      %c0_17 = arith.constant 0 : index
      %c0_18 = arith.constant 0 : index
      %26 = vector.load %arg8[%c0_17, %c0_18] : memref<8x128xf32, #tpu.memory_space<vmem>>, vector<8x128xf32>
      tpu.vector_store %arg8[%c0_17, %c0_18], %25 {strides = array<i32>} : memref<8x128xf32, #tpu.memory_space<vmem>>, vector<8x128xf32>,
    } else {
    }
    %c0 = arith.constant 0 : index
    %c0_1 = arith.constant 0 : index
    %3 = vector.load %arg2[%c0, %c0_1] : memref<8x128xf32, #tpu.memory_space<vmem>>, vector<8x128xf32>
    %4 = arith.truncf %3 : vector<8x128xf32> to vector<8x128xbf16>
    %c0_2 = arith.constant 0 : index
    %c0_3 = arith.constant 0 : index
    %5 = vector.load %arg3[%c0_2, %c0_3] : memref<128x128xbf16, #tpu.memory_space<vmem>>, vector<128x128xbf16>
    %cst = arith.constant dense<0.000000e+00> : vector<8x128xf32>
    %6 = tpu.matmul %4, %5, %cst {dimension_numbers = #tpu.dot_dimension_numbers<[1], [0], [0], [1], [0, 0, 1, 1], [], []>} : vector<8x128xbf16>, vector<128x128xbf16>, vector<8x128xf32> -> vector<8x128xf32>
    %c0_4 = arith.constant 0 : index
    %c0_5 = arith.constant 0 : index
    %7 = vector.load %arg4[%c0_4, %c0_5] : memref<1x128xf32, #tpu.memory_space<vmem>>, vector<1x128xf32>
    %8 = vector.broadcast %7 : vector<1x128xf32> to vector<8x128xf32>
    %9 = arith.addf %6, %8 : vector<8x128xf32>
    %10 = arith.negf %9 : vector<8x128xf32>
    %11 = math.exp %10 : vector<8x128xf32>
    %cst_6 = arith.constant 1.000000e+00 : f32
    %12 = vector.broadcast %cst_6 : f32 to vector<8x128xf32>
    %13 = arith.addf %12, %11 : vector<8x128xf32>
    %14 = arith.divf %12, %13 : vector<8x128xf32>
    %15 = arith.mulf %9, %14 : vector<8x128xf32>
    %c0_7 = arith.constant 0 : index
    %c0_8 = arith.constant 0 : index
    %16 = vector.load %arg8[%c0_7, %c0_8] : memref<8x128xf32, #tpu.memory_space<vmem>>, vector<8x128xf32>
    %17 = arith.truncf %15 : vector<8x128xf32> to vector<8x128xbf16>
    %c0_9 = arith.constant 0 : index
    %c0_10 = arith.constant 0 : index
    %18 = vector.load %arg5[%c0_9, %c0_10] : memref<128x128xbf16, #tpu.memory_space<vmem>>, vector<128x128xbf16>
    %cst_11 = arith.constant dense<0.000000e+00> : vector<8x128xf32>
    %19 = tpu.matmul %17, %18, %cst_11 {dimension_numbers = #tpu.dot_dimension_numbers<[1], [0], [0], [1], [0, 0, 1, 1], [], []>} : vector<8x128xbf16>, vector<128x128xbf16>, vector<8x128xf32> -> vector<8x128xf32>
    %20 = arith.addf %16, %19 : vector<8x128xf32>
    %c0_12 = arith.constant 0 : index
    %c0_13 = arith.constant 0 : index
    %21 = vector.load %arg8[%c0_12, %c0_13] : memref<8x128xf32, #tpu.memory_space<vmem>>, vector<8x128xf32>
    tpu.vector_store %arg8[%c0_12, %c0_13], %20 {strides = array<i32>} : memref<8x128xf32, #tpu.memory_space<vmem>>, vector<8x128xf32>,
    %c0_i32_14 = arith.constant 0 : i32
    %22 = arith.cmpi eq, %arg1, %c0_i32_14 : i32
    %23 = arith.extui %22 : i1 to i32
    %c0_i32_15 = arith.constant 0 : i32
    %24 = arith.cmpi ne, %23, %c0_i32_15 : i32
    scf.if %24 {
      %c0_16 = arith.constant 0 : index
      %c0_17 = arith.constant 0 : index
      %25 = vector.load %arg8[%c0_16, %c0_17] : memref<8x128xf32, #tpu.memory_space<vmem>>, vector<8x128xf32>
      %c0_18 = arith.constant 0 : index
      %c0_19 = arith.constant 0 : index
      %26 = vector.load %arg6[%c0_18, %c0_19] : memref<1x128xf32, #tpu.memory_space<vmem>>, vector<1x128xf32>
      %27 = vector.broadcast %26 : vector<1x128xf32> to vector<8x128xf32>
      %28 = arith.addf %25, %27 : vector<8x128xf32>
      %cst_20 = arith.constant 5.000000e-01 : f32
      %29 = vector.broadcast %cst_20 : f32 to vector<8x128xf32>
      %30 = arith.mulf %28, %29 : vector<8x128xf32>
      %c0_21 = arith.constant 0 : index
      %c0_22 = arith.constant 0 : index
      %31 = vector.load %arg7[%c0_21, %c0_22] : memref<8x128xf32, #tpu.memory_space<vmem>>, vector<8x128xf32>
      tpu.vector_store %arg7[%c0_21, %c0_22], %30 {strides = array<i32>} : memref<8x128xf32, #tpu.memory_space<vmem>>, vector<8x128xf32>,
    } else {
    }
    return
  }
  func.func @transform_0(%arg0: i32, %arg1: i32) -> (i32, i32) {
    %c0_i32 = arith.constant 0 : i32
    %c0_i32_0 = arith.constant 0 : i32
    return %arg0, %c0_i32 : i32, i32
  }
  func.func @transform_1(%arg0: i32, %arg1: i32) -> (i32, i32) {
    %c0_i32 = arith.constant 0 : i32
    %c0_i32_0 = arith.constant 0 : i32
    return %c0_i32, %arg1 : i32, i32
  }
  func.func @transform_2(%arg0: i32, %arg1: i32) -> (i32, i32) {
    %c0_i32 = arith.constant 0 : i32
    %c0_i32_0 = arith.constant 0 : i32
    return %c0_i32, %arg1 : i32, i32
  }
  func.func @transform_3(%arg0: i32, %arg1: i32) -> (i32, i32) {
    %c0_i32 = arith.constant 0 : i32
    %c0_i32_0 = arith.constant 0 : i32
    return %arg1, %c0_i32 : i32, i32
  }
  func.func @transform_4(%arg0: i32, %arg1: i32) -> (i32, i32) {
    %c0_i32 = arith.constant 0 : i32
    %c0_i32_0 = arith.constant 0 : i32
    %c0_i32_1 = arith.constant 0 : i32
    return %c0_i32, %c0_i32_0 : i32, i32
  }
  func.func @transform_5(%arg0: i32, %arg1: i32) -> (i32, i32) {
    %c0_i32 = arith.constant 0 : i32
    %c0_i32_0 = arith.constant 0 : i32
    return %arg0, %c0_i32 : i32, i32
  }
}

</mosaic_0001>

<bundles_post_ra>
// kernel: tpu_custom_call.1
= control target key start
LH: loop header
LB: loop body
LE: loop exit
PB: predicated region body
PF: predicated region fallthrough
CT: control target
= control target key end

     0   :  { %10 = vsyncpa [#allocation4], 0  ;;  %s1202_s0 = inlined_call_operand.hbm [shape: f32[16,128], index: 0, kind: input, shape index: {}]   ;;  %s1203_s1 = inlined_call_operand.hbm [shape: bf16[128,128], index: 1, kind: input, shape index: {}]   ;;  %s1204_s2 = inlined_call_operand.vmem [shape: f32[1,128], index: 2, kind: input, shape index: {}]   ;;  %s1205_s3 = inlined_call_operand.hbm [shape: bf16[128,128], index: 3, kind: input, shape index: {}]   ;;  %s1206_s4 = inlined_call_operand.vmem [shape: f32[1,128], index: 4, kind: input, shape index: {}]   ;;  %s1207_s5 = inlined_call_operand.hbm [shape: f32[16,128], index: 5, kind: output, shape index: {}]  }
   0x1   :  { %12 = vsyncpa [#allocation4 + $0x1], 0 }
   0x2   :  { %13 = vsyncpa [#allocation7], 0 }
   0x3   :  { %14 = vsyncpa [#allocation5], 0 }
   0x4   :  { %16 = vsyncpa [#allocation5 + $0x1], 0  ;;  %s1048_s18 = smov 0   ;;  %s1050_s19 = smov 0  }
   0x5   :  { %s1052_s20 = smov 0   ;;  %s1054_s21 = smov 0  }
   0x6   :  { %s1056_s22 = smov 0   ;;  %s1058_s23 = smov 0  }
   0x7 LB: > { %s646_s24 = sadd.s32 4294967295, %s1012_s23   ;;  %p648_p0 = scmp.ge.s32.totalorder %s1012_s23, 1  ;;  %s1012_s23 = sphi %s1058_s23, %s22_s23   ;;  %s1008_s22 = sphi %s1056_s22, %s1217_s22   ;;  %s1004_s21 = sphi %s1054_s21, %s1216_s21   ;;  %s1000_s20 = sphi %s1052_s20, %s1215_s20   ;;  %s996_s19 = sphi %s1050_s19, %s1214_s19   ;;  %s992_s18 = sphi %s1048_s18, %s1213_s18  }
   0x8   : > { %p1082_p1 = scmp.eq.s32.totalorder %s646_s24, 0  ;;  %p190_p2 = scmp.lt.s32.totalorder %s1012_s23, 3 }
   0x9   : > { %s203_s28 = sshll.u32 %s1203_s1, 4  ;;  %s1014_s30 = smov [#allocation6]   ;;  %s204_s28 = int_to_ptr.hbm [resolvable:$true] %s203_s28 }
   0xa   : > { %p1090_p3 = pnand %p648_p0, %p190_p2  ;;  %s205_s6 = sshll.u32 %s1014_s30, 4  ;;  %s206_s6 = int_to_ptr.vmem [resolvable:$true] %s205_s6 }
   0xb   : > { %p652_p6 = scmp.ge.s32.totalorder %s1012_s23, 2  ;;  %s226_s9 = sshll.u32 %s1205_s3, 4  ;;  %s227_s9 = int_to_ptr.hbm [resolvable:$true] %s226_s9 }
   0xc   : > { %p757_p4 = pneg %p1090_p3  ;;  %s1015_s10 = smov 64  }
   0xd   : > { %s1016_s11 = smov 4   ;;  %s1017_s12 = smov [#allocation8]  }
   0xe   : > { %p758_p5 = pnand %p757_p4, %p1082_p1  ;;  %s228_s13 = sshll.u32 %s1017_s12, 4  ;;  %s229_s13 = int_to_ptr.vmem [resolvable:$true] %s228_s13 }
   0xf   : > { %s34_s14 = sadd.s32 1, %s1008_s22  ;;  %s647_s15 = sadd.s32 4294967294, %s1012_s23  }
  0x10   : > { %760 = dma.hbm_to_vmem [thread:$0]  (!%p758_p5), %s204_s28, 1024, %s206_s6, [#allocation7], %s1015_s10, %s1015_s10, %s1016_s11  }
  0x11   : > { %763 = dma.hbm_to_vmem [thread:$0]  (!%p758_p5), %s227_s9, 1024, %s229_s13, [#allocation7], %s1015_s10, %s1015_s10, %s1016_s11  }
  0x12   : > { %p36_p7 = scmp.ge.s32.totalorder %s34_s14, 2  ;;  %s41_s16 = sadd.s32 1, %s1000_s20 }
  0x13   : > { %p48_p8 = scmp.ne.s32.totalorder %s1000_s20, %s996_s19  ;;  %p49_p9 = scmp.eq.s32.totalorder %s1012_s23, 0 }
  0x14   : > { %s1219_s14 = smov (%p36_p7, %s34_s14), 0  ;;  %p54_p10 = scmp.ne.s32.totalorder %s996_s19, %s992_s18 }
  0x15   : > { %s38_s17 = ssub.s32 %s1008_s22, %s1219_s14  ;;  %p177_p11 = scmp.eq.s32.totalorder %s646_s24, 1 }
  0x16   : > { %p39_p12 = scmp.eq.s32.totalorder %s38_s17, 0  ;;  %p1118_p13 = por %p1082_p1, %p54_p10 }
  0x17   : > { %p1122_p0 = por %p177_p11, %p48_p8  ;;  %p183_p2 = scmp.eq.s32.totalorder %s647_s15, 1 }
  0x18   : > { %s1127_s28 = scalar_select %p39_p12, %s1000_s20, %s41_s16  }
  0x19   : > { %p50_p4 = por %p49_p9, %p48_p8  ;;  %p1129_p5 = por %p183_p2, %p54_p10 }
  0x1a   : > { %s245_s6 = sand.u32 1, %s1000_s20   ;;  %s654_s24 = sshll.u32 %s1008_s22, 3 }
  0x1b   : > { %p774_p7 = scmp.lt.s32.totalorder %s1012_s23, 2  ;;  %s653_s7 = sshll.u32 %s245_s6, 3 }
  0x1c   : > { %s253_s10 = scalar_lea.hbm %s1202_s0, %s654_s24  ;;  %s249_s12 = scalar_lea.vmem [#allocation3], %s653_s7 }
  0x1d   : > { %s255_s11 = sshll.u32 %s253_s10, 4  ;;  %s257_s13 = sshll.u32 %s249_s12, 4  ;;  %s256_s11 = int_to_ptr.hbm [resolvable:$true] %s255_s11  ;;  %s258_s13 = int_to_ptr.vmem [resolvable:$true] %s257_s13 }
  0x1e   : > { %p765_p11 = pnand %p774_p7, %p50_p4  ;;  %s246_s15 = scalar_lea.sflag [#allocation4], %s245_s6 }
  0x1f   : > { %266 = sbr.rel (%p1090_p3) target bundleno = 365 (0x16d), region = 40  ;;  %s1142_s16 = sand.u32 (!%p1090_p3), 1, %s996_s19  }
  0x20   : > { %767 = dma.hbm_to_vmem [thread:$0]  (!%p765_p11), %s256_s11, 128, %s258_s13, %s246_s15  }
  0x21   : > { %s656_s17 = sshll.u32 (!%p1090_p3), %s1142_s16, 3  ;;  %s269_s24 = scalar_lea.sflag (!%p1090_p3), [#allocation4], %s1142_s16 }
  0x22   : > { %s272_s7 = scalar_lea.vmem (!%p1090_p3), [#allocation3], %s656_s17 }
  0x24   : > { %979 = dma.done.wait (%p1118_p13), %s269_s24, 128  }
  0x25   : > { %981 = vsyncadd (%p1118_p13), %s269_s24, 4294967168 }
  0x26   : > { %983 = dma.done.wait (%p1082_p1), [#allocation7], 2048  }
  0x27   : > { %985 = vsyncadd (%p1082_p1), [#allocation7], 4294965248  ;;  %v736_v0 = vld [vmem:[#allocation6 + $0x38] sm:$0xff]  ;;  %v735_v1 = vld [vmem:[#allocation6 + $0x30] sm:$0xff]  ;;  %s726_s26 = sshll.u32 %s1004_s21, 3  ;;  %s312_s12 = scalar_lea.vmem [#allocation9], %s656_s17 }
  0x28   : > { %392 = vmatpush.bf16.msra.mxu0 %v736_v0  ;;  %v734_v2 = vld [vmem:[#allocation6 + $0x28] sm:$0xff]  ;;  %v733_v3 = vld [vmem:[#allocation6 + $0x20] sm:$0xff]  ;;  %v732_v4 = vld [vmem:[#allocation6 + $0x18] sm:$0xff]  ;;  %s528_s11 = scalar_lea.hbm %s1207_s5, %s726_s26  ;;  %s530_s13 = sshll.u32 %s312_s12, 4  ;;  %s531_s13 = int_to_ptr.vmem [resolvable:$true] %s530_s13 }
  0x29   : > { %v731_v5 = vld [vmem:[#allocation6 + $0x10] sm:$0xff]  ;;  %v730_v6 = vld [vmem:[#allocation6 + $0x8] sm:$0xff]  ;;  %v729_v7 = vld [vmem:[#allocation6] sm:$0xff]  ;;  %s532_s15 = sshll.u32 %s528_s11, 4  ;;  %s518_s21 = scalar_lea.sflag [#allocation5], %s1142_s16  ;;  %s533_s15 = int_to_ptr.hbm [resolvable:$true] %s532_s15 }
  0x2a   : > { %v322_v8 = vld [vmem:[%s272_s7] sm:$0xff]  ;;  %v742_v12 = vld [vmem:[#allocation8 + $0x28] sm:$0xff]  ;;  %v741_v13 = vld [vmem:[#allocation8 + $0x20] sm:$0xff]  ;;  %s940_s24 = sshra.s32 %s533_s15, 4  ;;  %s946_s26 = scalar_lea.hbm %s1207_s5, 16  ;;  %s941_s24 = int_to_ptr.hbm [resolvable:$true] %s940_s24 }
  0x2b   : > { %v323_v9 = vpack.c.bf16 %v322_v8, %v322_v8  ;;  %v744_v10 = vld [vmem:[#allocation8 + $0x38] sm:$0xff]  ;;  %v743_v11 = vld [vmem:[#allocation8 + $0x30] sm:$0xff]  ;;  %v738_v16 = vld [vmem:[#allocation8 + $0x8] sm:$0xff]  ;;  %s942_s7 = scalar_lea.hbm %s941_s24, 8  ;;  %p947_p9 = scmp.lt.s32.totalorder %s941_s24, %s1207_s5 }
  0x2c   : > { %393 = vmatpush.bf16.msra.mxu0 %v735_v1  ;;  %491 = vmatpush.bf16.msra.mxu1 %v744_v10  ;;  %v740_v14 = vld [vmem:[#allocation8 + $0x18] sm:$0xff]  ;;  %v739_v15 = vld [vmem:[#allocation8 + $0x10] sm:$0xff]  ;;  %v737_v17 = vld [vmem:[#allocation8] sm:$0xff]  ;;  %p943_p1 = scmp.ne.s32.totalorder %s941_s24, %s942_s7  ;;  %p948_p10 = scmp.lt.s32.totalorder %s946_s26, %s942_s7 }
  0x2d   : > { %v830_v18 = vld [vmem:[%s1204_s2] ss:$0 sm:$0xff] }
  0x2e   : > { %v831_v37 = vld [vmem:[%s1206_s4] ss:$0 sm:$0xff]  ;;  %p944_p3 = pnand %p943_p1, %p1122_p0  ;;  %p949_p12 = por %p948_p10, %p947_p9 }
  0x30   : > { %394 = vmatpush.bf16.msra.mxu0 %v734_v2  ;;  %492 = vmatpush.bf16.msra.mxu1 %v743_v11  ;;  %p945_p8 = pneg %p944_p3 }
  0x32   : > { %p950_p13 = pnand %p949_p12, %p945_p8 }
  0x34   : > { %395 = vmatpush.bf16.msra.mxu0 %v733_v3  ;;  %493 = vmatpush.bf16.msra.mxu1 %v742_v12 }
  0x38   : > { %396 = vmatpush.bf16.msra.mxu0 %v732_v4  ;;  %494 = vmatpush.bf16.msra.mxu1 %v741_v13 }
  0x3c   : > { %397 = vmatpush.bf16.msra.mxu0 %v731_v5  ;;  %495 = vmatpush.bf16.msra.mxu1 %v740_v14 }
  0x40   : > { %398 = vmatpush.bf16.msra.mxu0 %v730_v6  ;;  %496 = vmatpush.bf16.msra.mxu1 %v739_v15 }
  0x44   : > { %399 = vmatpush.bf16.msra.mxu0 %v729_v7  ;;  %497 = vmatpush.bf16.msra.mxu1 %v738_v16 }
  0x47   : > { %400 = vmatmul.bf16.vlgmr.msra.gmra.mxu0 %v323_v9 }
  0x48   : > { %498 = vmatpush.bf16.msra.mxu1 %v737_v17 }
  0xc4   : > { %v401_v19 = vpop.f32.mrf.mxu0 }
  0xc5   : > { %v402_v20 = vadd.f32 %v830_v18, %v401_v19 }
  0xc7   : > { %v692_v21 = vmul.f32 -1.442695, %v402_v20 }
  0xc9   : > { %832 = vpow2.f32 %v692_v21 }
  0xcc   : > { %v403_v22 = vpop.f32.mrf.mxu0 }
  0xcf   : > { %v833_v23 = vpop.eup %832 }
  0xd0   : > { %v408_v24 = vadd.f32 1.0, %v833_v23 }
  0xd2   : > { %834 = vrcp.f32 %v408_v24  ;;  %v420_v28 = vand.u32 2147483648, %v408_v24  ;;  %v418_v30 = vand.u32 2147483647, %v408_v24  ;;  %vm414_vm1 = vweird.f32 %v408_v24 }
  0xd4   : > { %v421_v32 = vor.u32 1.1754944e-38, %v420_v28  ;;  %vm419_vm3 = vcmp.eq.f32.partialorder %v418_v30, 8.507059e+37 }
  0xd8   : > { %v835_v25 = vpop.eup %834 }
  0xd9   : > { %v410_v26 = vmul.f32 %v835_v25, %v408_v24  ;;  %vm415_vm0 = vweird.f32 %v835_v25 }
  0xda   : > { %vm416_vm2 = vmor %vm414_vm1, %vm415_vm0 }
  0xdb   : > { %v411_v27 = vsub.f32 1.0, %v410_v26 }
  0xdd   : > { %v412_v29 = vmul.f32 %v835_v25, %v411_v27 }
  0xdf   : > { %v413_v31 = vadd.f32 %v835_v25, %v412_v29 }
  0xe1   : > { %v417_v33 = vsel %vm416_vm2, %v835_v25, %v413_v31 }
  0xe2   : > { %v422_v34 = vsel %vm419_vm3, %v421_v32, %v417_v33 }
  0xe3   : > { %v424_v35 = vmul.f32 %v422_v34, %v402_v20 }
  0xe5   : > { %v426_v36 = vpack.c.bf16 %v424_v35, %v424_v35 }
  0xe7   : > { %499 = vmatmul.bf16.vlgmr.msra.gmra.mxu1 %v426_v36 }
 0x164   : > { %v500_v38 = vpop.f32.mrf.mxu1 }
 0x165   : > { %v514_v39 = vadd.f32 %v831_v37, %v500_v38 }
 0x167   : > { %v515_v40 = vmul.f32 0.5, %v514_v39 }
 0x169   : > { %516 = vst [vmem:[%s312_s12] sm:$0xff] %v515_v40 }
 0x16a   : > { %953 = shalt.err (!%p950_p13)
}
 0x16b   : > { %755 = dma.vmem_to_hbm [thread:$0]  (%p1122_p0), %s531_s13, 128, %s533_s15, %s518_s21  }
 0x16c   : > { %v502_v41 = vpop.f32.mrf.mxu1 }
 0x16d PF: > { %s544_s16 = sand.u32 1, %s992_s18   ;;  %p769_p2 = pnand %p652_p6, %p1129_p5 }
 0x16e   : > { %s545_s8 = scalar_lea.sflag [#allocation5], %s544_s16 }
 0x16f   : > { %p770_p4 = pneg %p769_p2 }
 0x171   : > { %987 = dma.done.wait (%p770_p4), %s545_s8, 128  }
 0x172   : > { %989 = vsyncadd (%p770_p4), %s545_s8, 4294967168  ;;  %s22_s23 = sadd.s32 1, %s1012_s23   ;;  %s1213_s18 = smov %s996_s19 }
 0x173   : > { %p19_p7 = scmp.ge.s32.totalorder %s22_s23, 4   ;;  %s1214_s19 = smov %s1000_s20 }
 0x174   : > { %s1215_s20 = smov %s1127_s28  ;;  %s1216_s21 = smov %s1008_s22 }
 0x175   : > { %s1217_s22 = smov %s1219_s14  ;;  %21 = sbr.rel (!%p19_p7) target bundleno = 7 (0x7), region = 106 }
 0x17a   :  { %551 = vsyncpa [#allocation4], 1 }
 0x17b   :  { %553 = vsyncpa [#allocation4 + $0x1], 1 }
 0x17c   :  { %554 = vsyncpa [#allocation7], 1 }
 0x17d   :  { %555 = vsyncpa [#allocation5], 1 }
 0x17e   :  { %557 = vsyncpa [#allocation5 + $0x1], 1 }

// kernel: tpu_custom_call.1
= control target key start
LH: loop header
LB: loop body
LE: loop exit
PB: predicated region body
PF: predicated region fallthrough
CT: control target
= control target key end

     0   :  { %10 = vsyncpa [#allocation4], 0  ;;  %s1202_s0 = inlined_call_operand.hbm [shape: f32[16,128], index: 0, kind: input, shape index: {}]   ;;  %s1203_s1 = inlined_call_operand.hbm [shape: bf16[128,128], index: 1, kind: input, shape index: {}]   ;;  %s1204_s2 = inlined_call_operand.vmem [shape: f32[1,128], index: 2, kind: input, shape index: {}]   ;;  %s1205_s3 = inlined_call_operand.hbm [shape: bf16[128,128], index: 3, kind: input, shape index: {}]   ;;  %s1206_s4 = inlined_call_operand.vmem [shape: f32[1,128], index: 4, kind: input, shape index: {}]   ;;  %s1207_s5 = inlined_call_operand.hbm [shape: f32[16,128], index: 5, kind: output, shape index: {}]  }
   0x1   :  { %12 = vsyncpa [#allocation4 + $0x1], 0 }
   0x2   :  { %13 = vsyncpa [#allocation7], 0 }
   0x3   :  { %14 = vsyncpa [#allocation5], 0 }
   0x4   :  { %16 = vsyncpa [#allocation5 + $0x1], 0  ;;  %s1048_s18 = smov 0   ;;  %s1050_s19 = smov 0  }
   0x5   :  { %s1052_s20 = smov 0   ;;  %s1054_s21 = smov 0  }
   0x6   :  { %s1056_s22 = smov 0   ;;  %s1058_s23 = smov 0  }
   0x7 LB: > { %s646_s24 = sadd.s32 4294967295, %s1012_s23   ;;  %p648_p0 = scmp.ge.s32.totalorder %s1012_s23, 1  ;;  %s1012_s23 = sphi %s1058_s23, %s22_s23   ;;  %s1008_s22 = sphi %s1056_s22, %s1217_s22   ;;  %s1004_s21 = sphi %s1054_s21, %s1216_s21   ;;  %s1000_s20 = sphi %s1052_s20, %s1215_s20   ;;  %s996_s19 = sphi %s1050_s19, %s1214_s19   ;;  %s992_s18 = sphi %s1048_s18, %s1213_s18  }
   0x8   : > { %p1082_p1 = scmp.eq.s32.totalorder %s646_s24, 0  ;;  %p190_p2 = scmp.lt.s32.totalorder %s1012_s23, 3 }
   0x9   : > { %s203_s28 = sshll.u32 %s1203_s1, 4  ;;  %s1014_s30 = smov [#allocation6]   ;;  %s204_s28 = int_to_ptr.hbm [resolvable:$true] %s203_s28 }
   0xa   : > { %p1090_p3 = pnand %p648_p0, %p190_p2  ;;  %s205_s6 = sshll.u32 %s1014_s30, 4  ;;  %s206_s6 = int_to_ptr.vmem [resolvable:$true] %s205_s6 }
   0xb   : > { %p652_p6 = scmp.ge.s32.totalorder %s1012_s23, 2  ;;  %s226_s9 = sshll.u32 %s1205_s3, 4  ;;  %s227_s9 = int_to_ptr.hbm [resolvable:$true] %s226_s9 }
   0xc   : > { %p757_p4 = pneg %p1090_p3  ;;  %s1015_s10 = smov 64  }
   0xd   : > { %s1016_s11 = smov 4   ;;  %s1017_s12 = smov [#allocation8]  }
   0xe   : > { %p758_p5 = pnand %p757_p4, %p1082_p1  ;;  %s228_s13 = sshll.u32 %s1017_s12, 4  ;;  %s229_s13 = int_to_ptr.vmem [resolvable:$true] %s228_s13 }
   0xf   : > { %s34_s14 = sadd.s32 1, %s1008_s22  ;;  %s647_s15 = sadd.s32 4294967294, %s1012_s23  }
  0x10   : > { %760 = dma.hbm_to_vmem [thread:$0]  (!%p758_p5), %s204_s28, 1024, %s206_s6, [#allocation7], %s1015_s10, %s1015_s10, %s1016_s11  }
  0x11   : > { %763 = dma.hbm_to_vmem [thread:$0]  (!%p758_p5), %s227_s9, 1024, %s229_s13, [#allocation7], %s1015_s10, %s1015_s10, %s1016_s11  }
  0x12   : > { %p36_p7 = scmp.ge.s32.totalorder %s34_s14, 2  ;;  %s41_s16 = sadd.s32 1, %s1000_s20 }
  0x13   : > { %p48_p8 = scmp.ne.s32.totalorder %s1000_s20, %s996_s19  ;;  %p49_p9 = scmp.eq.s32.totalorder %s1012_s23, 0 }
  0x14   : > { %s1219_s14 = smov (%p36_p7, %s34_s14), 0  ;;  %p54_p10 = scmp.ne.s32.totalorder %s996_s19, %s992_s18 }
  0x15   : > { %s38_s17 = ssub.s32 %s1008_s22, %s1219_s14  ;;  %p177_p11 = scmp.eq.s32.totalorder %s646_s24, 1 }
  0x16   : > { %p39_p12 = scmp.eq.s32.totalorder %s38_s17, 0  ;;  %p1118_p13 = por %p1082_p1, %p54_p10 }
  0x17   : > { %p1122_p0 = por %p177_p11, %p48_p8  ;;  %p183_p2 = scmp.eq.s32.totalorder %s647_s15, 1 }
  0x18   : > { %s1127_s28 = scalar_select %p39_p12, %s1000_s20, %s41_s16  }
  0x19   : > { %p50_p4 = por %p49_p9, %p48_p8  ;;  %p1129_p5 = por %p183_p2, %p54_p10 }
  0x1a   : > { %s245_s6 = sand.u32 1, %s1000_s20   ;;  %s654_s24 = sshll.u32 %s1008_s22, 3 }
  0x1b   : > { %p774_p7 = scmp.lt.s32.totalorder %s1012_s23, 2  ;;  %s653_s7 = sshll.u32 %s245_s6, 3 }
  0x1c   : > { %s253_s10 = scalar_lea.hbm %s1202_s0, %s654_s24  ;;  %s249_s12 = scalar_lea.vmem [#allocation3], %s653_s7 }
  0x1d   : > { %s255_s11 = sshll.u32 %s253_s10, 4  ;;  %s257_s13 = sshll.u32 %s249_s12, 4  ;;  %s256_s11 = int_to_ptr.hbm [resolvable:$true] %s255_s11  ;;  %s258_s13 = int_to_ptr.vmem [resolvable:$true] %s257_s13 }
  0x1e   : > { %p765_p11 = pnand %p774_p7, %p50_p4  ;;  %s246_s15 = scalar_lea.sflag [#allocation4], %s245_s6 }
  0x1f   : > { %266 = sbr.rel (%p1090_p3) target bundleno = 365 (0x16d), region = 40  ;;  %s1142_s16 = sand.u32 (!%p1090_p3), 1, %s996_s19  }
  0x20   : > { %767 = dma.hbm_to_vmem [thread:$0]  (!%p765_p11), %s256_s11, 128, %s258_s13, %s246_s15  }
  0x21   : > { %s656_s17 = sshll.u32 (!%p1090_p3), %s1142_s16, 3  ;;  %s269_s24 = scalar_lea.sflag (!%p1090_p3), [#allocation4], %s1142_s16 }
  0x22   : > { %s272_s7 = scalar_lea.vmem (!%p1090_p3), [#allocation3], %s656_s17 }
  0x24   : > { %979 = dma.done.wait (%p1118_p13), %s269_s24, 128  }
  0x25   : > { %981 = vsyncadd (%p1118_p13), %s269_s24, 4294967168 }
  0x26   : > { %983 = dma.done.wait (%p1082_p1), [#allocation7], 2048  }
  0x27   : > { %985 = vsyncadd (%p1082_p1), [#allocation7], 4294965248  ;;  %v736_v0 = vld [vmem:[#allocation6 + $0x38] sm:$0xff]  ;;  %v735_v1 = vld [vmem:[#allocation6 + $0x30] sm:$0xff]  ;;  %s726_s26 = sshll.u32 %s1004_s21, 3  ;;  %s312_s12 = scalar_lea.vmem [#allocation9], %s656_s17 }
  0x28   : > { %392 = vmatpush.bf16.msra.mxu0 %v736_v0  ;;  %v734_v2 = vld [vmem:[#allocation6 + $0x28] sm:$0xff]  ;;  %v733_v3 = vld [vmem:[#allocation6 + $0x20] sm:$0xff]  ;;  %v732_v4 = vld [vmem:[#allocation6 + $0x18] sm:$0xff]  ;;  %s528_s11 = scalar_lea.hbm %s1207_s5, %s726_s26  ;;  %s530_s13 = sshll.u32 %s312_s12, 4  ;;  %s531_s13 = int_to_ptr.vmem [resolvable:$true] %s530_s13 }
  0x29   : > { %v731_v5 = vld [vmem:[#allocation6 + $0x10] sm:$0xff]  ;;  %v730_v6 = vld [vmem:[#allocation6 + $0x8] sm:$0xff]  ;;  %v729_v7 = vld [vmem:[#allocation6] sm:$0xff]  ;;  %s532_s15 = sshll.u32 %s528_s11, 4  ;;  %s518_s21 = scalar_lea.sflag [#allocation5], %s1142_s16  ;;  %s533_s15 = int_to_ptr.hbm [resolvable:$true] %s532_s15 }
  0x2a   : > { %v322_v8 = vld [vmem:[%s272_s7] sm:$0xff]  ;;  %v742_v12 = vld [vmem:[#allocation8 + $0x28] sm:$0xff]  ;;  %v741_v13 = vld [vmem:[#allocation8 + $0x20] sm:$0xff]  ;;  %s940_s24 = sshra.s32 %s533_s15, 4  ;;  %s946_s26 = scalar_lea.hbm %s1207_s5, 16  ;;  %s941_s24 = int_to_ptr.hbm [resolvable:$true] %s940_s24 }
  0x2b   : > { %v323_v9 = vpack.c.bf16 %v322_v8, %v322_v8  ;;  %v744_v10 = vld [vmem:[#allocation8 + $0x38] sm:$0xff]  ;;  %v743_v11 = vld [vmem:[#allocation8 + $0x30] sm:$0xff]  ;;  %v738_v16 = vld [vmem:[#allocation8 + $0x8] sm:$0xff]  ;;  %s942_s7 = scalar_lea.hbm %s941_s24, 8  ;;  %p947_p9 = scmp.lt.s32.totalorder %s941_s24, %s1207_s5 }
  0x2c   : > { %393 = vmatpush.bf16.msra.mxu0 %v735_v1  ;;  %491 = vmatpush.bf16.msra.mxu1 %v744_v10  ;;  %v740_v14 = vld [vmem:[#allocation8 + $0x18] sm:$0xff]  ;;  %v739_v15 = vld [vmem:[#allocation8 + $0x10] sm:$0xff]  ;;  %v737_v17 = vld [vmem:[#allocation8] sm:$0xff]  ;;  %p943_p1 = scmp.ne.s32.totalorder %s941_s24, %s942_s7  ;;  %p948_p10 = scmp.lt.s32.totalorder %s946_s26, %s942_s7 }
  0x2d   : > { %v830_v18 = vld [vmem:[%s1204_s2] ss:$0 sm:$0xff] }
  0x2e   : > { %v831_v37 = vld [vmem:[%s1206_s4] ss:$0 sm:$0xff]  ;;  %p944_p3 = pnand %p943_p1, %p1122_p0  ;;  %p949_p12 = por %p948_p10, %p947_p9 }
  0x30   : > { %394 = vmatpush.bf16.msra.mxu0 %v734_v2  ;;  %492 = vmatpush.bf16.msra.mxu1 %v743_v11  ;;  %p945_p8 = pneg %p944_p3 }
  0x32   : > { %p950_p13 = pnand %p949_p12, %p945_p8 }
  0x34   : > { %395 = vmatpush.bf16.msra.mxu0 %v733_v3  ;;  %493 = vmatpush.bf16.msra.mxu1 %v742_v12 }
  0x38   : > { %396 = vmatpush.bf16.msra.mxu0 %v732_v4  ;;  %494 = vmatpush.bf16.msra.mxu1 %v741_v13 }
  0x3c   : > { %397 = vmatpush.bf16.msra.mxu0 %v731_v5  ;;  %495 = vmatpush.bf16.msra.mxu1 %v740_v14 }
  0x40   : > { %398 = vmatpush.bf16.msra.mxu0 %v730_v6  ;;  %496 = vmatpush.bf16.msra.mxu1 %v739_v15 }
  0x44   : > { %399 = vmatpush.bf16.msra.mxu0 %v729_v7  ;;  %497 = vmatpush.bf16.msra.mxu1 %v738_v16 }
  0x47   : > { %400 = vmatmul.bf16.vlgmr.msra.gmra.mxu0 %v323_v9 }
  0x48   : > { %498 = vmatpush.bf16.msra.mxu1 %v737_v17 }
  0xc4   : > { %v401_v19 = vpop.f32.mrf.mxu0 }
  0xc5   : > { %v402_v20 = vadd.f32 %v830_v18, %v401_v19 }
  0xc7   : > { %v692_v21 = vmul.f32 -1.442695, %v402_v20 }
  0xc9   : > { %832 = vpow2.f32 %v692_v21 }
  0xcc   : > { %v403_v22 = vpop.f32.mrf.mxu0 }
  0xcf   : > { %v833_v23 = vpop.eup %832 }
  0xd0   : > { %v408_v24 = vadd.f32 1.0, %v833_v23 }
  0xd2   : > { %834 = vrcp.f32 %v408_v24  ;;  %v420_v28 = vand.u32 2147483648, %v408_v24  ;;  %v418_v30 = vand.u32 2147483647, %v408_v24  ;;  %vm414_vm1 = vweird.f32 %v408_v24 }
  0xd4   : > { %v421_v32 = vor.u32 1.1754944e-38, %v420_v28  ;;  %vm419_vm3 = vcmp.eq.f32.partialorder %v418_v30, 8.507059e+37 }
  0xd8   : > { %v835_v25 = vpop.eup %834 }
  0xd9   : > { %v410_v26 = vmul.f32 %v835_v25, %v408_v24  ;;  %vm415_vm0 = vweird.f32 %v835_v25 }
  0xda   : > { %vm416_vm2 = vmor %vm414_vm1, %vm415_vm0 }
  0xdb   : > { %v411_v27 = vsub.f32 1.0, %v410_v26 }
  0xdd   : > { %v412_v29 = vmul.f32 %v835_v25, %v411_v27 }
  0xdf   : > { %v413_v31 = vadd.f32 %v835_v25, %v412_v29 }
  0xe1   : > { %v417_v33 = vsel %vm416_vm2, %v835_v25, %v413_v31 }
  0xe2   : > { %v422_v34 = vsel %vm419_vm3, %v421_v32, %v417_v33 }
  0xe3   : > { %v424_v35 = vmul.f32 %v422_v34, %v402_v20 }
  0xe5   : > { %v426_v36 = vpack.c.bf16 %v424_v35, %v424_v35 }
  0xe7   : > { %499 = vmatmul.bf16.vlgmr.msra.gmra.mxu1 %v426_v36 }
 0x164   : > { %v500_v38 = vpop.f32.mrf.mxu1 }
 0x165   : > { %v514_v39 = vadd.f32 %v831_v37, %v500_v38 }
 0x167   : > { %v515_v40 = vmul.f32 0.5, %v514_v39 }
 0x169   : > { %516 = vst [vmem:[%s312_s12] sm:$0xff] %v515_v40 }
 0x16a   : > { %953 = shalt.err (!%p950_p13)
}
 0x16b   : > { %755 = dma.vmem_to_hbm [thread:$0]  (%p1122_p0), %s531_s13, 128, %s533_s15, %s518_s21  }
 0x16c   : > { %v502_v41 = vpop.f32.mrf.mxu1 }
 0x16d PF: > { %s544_s16 = sand.u32 1, %s992_s18   ;;  %p769_p2 = pnand %p652_p6, %p1129_p5 }
 0x16e   : > { %s545_s8 = scalar_lea.sflag [#allocation5], %s544_s16 }
 0x16f   : > { %p770_p4 = pneg %p769_p2 }
 0x171   : > { %987 = dma.done.wait (%p770_p4), %s545_s8, 128  }
 0x172   : > { %989 = vsyncadd (%p770_p4), %s545_s8, 4294967168  ;;  %s22_s23 = sadd.s32 1, %s1012_s23   ;;  %s1213_s18 = smov %s996_s19 }
 0x173   : > { %p19_p7 = scmp.ge.s32.totalorder %s22_s23, 4   ;;  %s1214_s19 = smov %s1000_s20 }
 0x174   : > { %s1215_s20 = smov %s1127_s28  ;;  %s1216_s21 = smov %s1008_s22 }
 0x175   : > { %s1217_s22 = smov %s1219_s14  ;;  %21 = sbr.rel (!%p19_p7) target bundleno = 7 (0x7), region = 106 }
 0x17a   :  { %551 = vsyncpa [#allocation4], 1 }
 0x17b   :  { %553 = vsyncpa [#allocation4 + $0x1], 1 }
 0x17c   :  { %554 = vsyncpa [#allocation7], 1 }
 0x17d   :  { %555 = vsyncpa [#allocation5], 1 }
 0x17e   :  { %557 = vsyncpa [#allocation5 + $0x1], 1 }

</bundles_post_ra>
